<compile_context>
chip_gen: v7x
topology: tpu7x:2x2x1
jax: 0.10.0
libtpu: 0.0.40
codegen_flags: <defaults>
</compile_context>

<pallas_src>
import functools

import jax
import jax.numpy as jnp
from jax import lax
from jax.experimental import pallas as pl
from jax.experimental.pallas import tpu as pltpu

LANE = 128
SUBL = 8


def _soft_dice_kernel(x_ref, t_ref, o_ref, *, block_rows, sub_rows,
                      valid_rows, needs_mask):
    i = pl.program_id(0)

    @pl.when(i == 0)
    def _():
        o_ref[...] = jnp.zeros_like(o_ref)

    row0 = i * block_rows
    n_sub = block_rows // sub_rows

    def body(s, carry):
        a_xt, a_x, a_t = carry
        r = pl.multiple_of(s * sub_rows, sub_rows)
        x = x_ref[pl.ds(r, sub_rows), :]
        t = t_ref[pl.ds(r, sub_rows), :]
        if needs_mask:
            # Zero out rows past the end of the real data (last partial block
            # holds unspecified values in VMEM).  Select, not multiply, so
            # garbage NaN/Inf bits cannot propagate.
            gid = (row0 + r
                   + lax.broadcasted_iota(jnp.int32, (sub_rows, LANE), 0))
            valid = gid < valid_rows
            x = jnp.where(valid, x, jnp.zeros_like(x))
            t = jnp.where(valid, t, jnp.zeros_like(t))
        x = x.astype(jnp.float32)
        t = t.astype(jnp.float32)
        xr = x.reshape(sub_rows // SUBL, SUBL, LANE)   # free: (8,128) aligned
        tr = t.reshape(sub_rows // SUBL, SUBL, LANE)
        # Pure VPU partial reductions down to one (8,128) vreg each.
        a_xt = a_xt + jnp.sum(xr * tr, axis=0)
        a_x = a_x + jnp.sum(xr, axis=0)
        a_t = a_t + jnp.sum(tr, axis=0)
        return a_xt, a_x, a_t

    zero = jnp.zeros((SUBL, LANE), jnp.float32)
    a_xt, a_x, a_t = lax.fori_loop(0, n_sub, body, (zero, zero, zero),
                                   unroll=True)

    # Accumulate into the VMEM-resident, lane-dense output tile.
    o_ref[0] += a_xt
    o_ref[1] += a_x
    o_ref[2] += a_t


@functools.partial(jax.jit, static_argnames=("smooth",))
def soft_dice_loss(inputs, target, *, smooth=1e-3):
    """inputs, target: arrays of identical shape (e.g. NCHW probabilities / mask)."""
    assert inputs.shape == target.shape
    total = inputs.size
    itemsize = jnp.dtype(inputs.dtype).itemsize

    def _rup(a, b):
        return (a + b - 1) // b * b

    def _rdown(a, b):
        return a // b * b

    # Lane-dense, (almost always) pad-free layout: flatten to (rows, 128).
    # A pad is only emitted when total % (8*128) != 0 and is < 1024 elements.
    tile_elems = SUBL * LANE
    padded_total = _rup(total, tile_elems)

    def _prep(a):
        flat = a.reshape(-1)
        if padded_total != total:
            flat = jnp.pad(flat, (0, padded_total - total))  # zeros are no-ops
        return flat.reshape(padded_total // LANE, LANE)

    x2 = _prep(inputs)
    t2 = _prep(target)
    rows = padded_total // LANE

    # Block sizing: ~4 MiB per input per pipeline buffer (16 MiB total with
    # double buffering) to amortize the ~0.35 us/step pipeline overhead.
    max_block_rows = max(SUBL, (4 * 1024 * 1024) // (LANE * itemsize))
    sub_rows = min(256, rows)                     # bounds live vregs in-kernel
    block_rows = max(sub_rows, _rdown(min(max_block_rows, rows), sub_rows))
    num_blocks = int(pl.cdiv(rows, block_rows))
    needs_mask = (rows % block_rows) != 0         # only last block is partial

    kernel = functools.partial(
        _soft_dice_kernel, block_rows=block_rows, sub_rows=sub_rows,
        valid_rows=rows, needs_mask=needs_mask)

    partials = pl.pallas_call(
        kernel,
        out_shape=jax.ShapeDtypeStruct((3, SUBL, LANE), jnp.float32),
        grid=(num_blocks,),
        in_specs=[
            pl.BlockSpec((block_rows, LANE), lambda i: (i, 0)),
            pl.BlockSpec((block_rows, LANE), lambda i: (i, 0)),
        ],
        out_specs=pl.BlockSpec((3, SUBL, LANE), lambda i: (0, 0, 0)),
        compiler_params=pltpu.CompilerParams(
            dimension_semantics=("arbitrary",),
            vmem_limit_bytes=32 * 1024 * 1024),
    )(x2, t2)

    # Final tiny cross-lane reduction + dice epilogue in JAX (fused under jit).
    sums = jnp.sum(partials, axis=(1, 2), dtype=jnp.float32)   # (3,)
    inter, sum_x, sum_t = sums[0], sums[1], sums[2]
    dice_coef = (2.0 * inter + smooth) / (sum_x + sum_t + smooth)
    return 1.0 - dice_coef


def _reference(inputs, target, *, smooth=1e-3):
    x = inputs.astype(jnp.float32).reshape(-1)
    t = target.astype(jnp.float32).reshape(-1)
    inter = jnp.sum(x * t)
    return 1.0 - (2.0 * inter + smooth) / (jnp.sum(x) + jnp.sum(t) + smooth)


if __name__ == "__main__":
    key = jax.random.PRNGKey(0)
    k1, k2 = jax.random.split(key)
    # NCHW predicted probabilities and binary mask target
    x = jax.nn.sigmoid(jax.random.normal(k1, (2, 4, 16, 16), dtype=jnp.float32))
    tgt = (jax.random.uniform(k2, (2, 4, 16, 16)) > 0.5).astype(jnp.float32)

    loss = jax.block_until_ready(soft_dice_loss(x, tgt))
    ref = jax.block_until_ready(_reference(x, tgt))
    assert jnp.allclose(loss, ref, atol=1e-5, rtol=1e-5), (loss, ref)
    print("KERNEL_OK")
</pallas_src>

<mosaic_0001>
module attributes {stable_mosaic.version = 11 : i64} {
  func.func @_soft_dice_kernel(%arg0: i32, %arg1: memref<16x128xf32, #tpu.memory_space<vmem>>, %arg2: memref<16x128xf32, #tpu.memory_space<vmem>>, %arg3: memref<3x8x128xf32, #tpu.memory_space<vmem>>) attributes {dimension_semantics = [#tpu.dimension_semantics<arbitrary>], iteration_bounds = array<i64: 1>, scalar_prefetch = 0 : i64, scratch_operands = 0 : i64, tpu.core_type = #tpu.core_type<tc>, window_params = [{transform_indices = @transform_0, window_bounds = array<i64: 16, 128>}, {transform_indices = @transform_1, window_bounds = array<i64: 16, 128>}, {pipeline_mode = #tpu.pipeline_mode<synchronous>, transform_indices = @transform_2, window_bounds = array<i64: 3, 8, 128>}]} {
    %c0_i32 = arith.constant 0 : i32
    %0 = arith.cmpi eq, %arg0, %c0_i32 : i32
    %1 = arith.extui %0 : i1 to i32
    %c0_i32_0 = arith.constant 0 : i32
    %2 = arith.cmpi ne, %1, %c0_i32_0 : i32
    scf.if %2 {
      %cst_22 = arith.constant 0.000000e+00 : f32
      %37 = vector.broadcast %cst_22 : f32 to vector<3x8x128xf32>
      %c0_23 = arith.constant 0 : index
      %c0_24 = arith.constant 0 : index
      %c0_25 = arith.constant 0 : index
      %38 = vector.load %arg3[%c0_23, %c0_24, %c0_25] : memref<3x8x128xf32, #tpu.memory_space<vmem>>, vector<3x8x128xf32>
      tpu.vector_store %arg3[%c0_23, %c0_24, %c0_25], %37 {strides = array<i32>} : memref<3x8x128xf32, #tpu.memory_space<vmem>>, vector<3x8x128xf32>,
    } else {
    }
    %cst = arith.constant 0.000000e+00 : f32
    %3 = vector.broadcast %cst : f32 to vector<8x128xf32>
    %c0_i32_1 = arith.constant 0 : i32
    %c16_i32 = arith.constant 16 : i32
    %4 = arith.muli %c0_i32_1, %c16_i32 : i32
    %5 = tpu.assume_multiple %4, 16 : i32
    %6 = arith.index_cast %5 : i32 to index
    %c0 = arith.constant 0 : index
    %7 = vector.load %arg1[%6, %c0] : memref<16x128xf32, #tpu.memory_space<vmem>>, vector<16x128xf32>
    %8 = arith.index_cast %5 : i32 to index
    %c0_2 = arith.constant 0 : index
    %9 = vector.load %arg2[%8, %c0_2] : memref<16x128xf32, #tpu.memory_space<vmem>>, vector<16x128xf32>
    %10 = vector.shape_cast %7 : vector<16x128xf32> to vector<2x8x128xf32>
    %11 = vector.shape_cast %9 : vector<16x128xf32> to vector<2x8x128xf32>
    %12 = arith.mulf %10, %11 : vector<2x8x128xf32>
    %cst_3 = arith.constant dense<0.000000e+00> : vector<8x128xf32>
    %13 = vector.multi_reduction <add>, %12, %cst_3 [0] : vector<2x8x128xf32> to vector<8x128xf32>
    %14 = arith.addf %3, %13 : vector<8x128xf32>
    %cst_4 = arith.constant dense<0.000000e+00> : vector<8x128xf32>
    %15 = vector.multi_reduction <add>, %10, %cst_4 [0] : vector<2x8x128xf32> to vector<8x128xf32>
    %16 = arith.addf %3, %15 : vector<8x128xf32>
    %cst_5 = arith.constant dense<0.000000e+00> : vector<8x128xf32>
    %17 = vector.multi_reduction <add>, %11, %cst_5 [0] : vector<2x8x128xf32> to vector<8x128xf32>
    %18 = arith.addf %3, %17 : vector<8x128xf32>
    %c1_i32 = arith.constant 1 : i32
    %c0_6 = arith.constant 0 : index
    %c0_7 = arith.constant 0 : index
    %c0_8 = arith.constant 0 : index
    %19 = vector.load %arg3[%c0_6, %c0_7, %c0_8] : memref<3x8x128xf32, #tpu.memory_space<vmem>>, vector<1x8x128xf32>
    %20 = vector.shape_cast %19 : vector<1x8x128xf32> to vector<8x128xf32>
    %21 = arith.addf %20, %14 : vector<8x128xf32>
    %c0_9 = arith.constant 0 : index
    %c0_10 = arith.constant 0 : index
    %c0_11 = arith.constant 0 : index
    %22 = vector.load %arg3[%c0_9, %c0_10, %c0_11] : memref<3x8x128xf32, #tpu.memory_space<vmem>>, vector<1x8x128xf32>
    %23 = vector.shape_cast %22 : vector<1x8x128xf32> to vector<8x128xf32>
    %24 = vector.shape_cast %21 : vector<8x128xf32> to vector<1x8x128xf32>
    tpu.vector_store %arg3[%c0_9, %c0_10, %c0_11], %24 {strides = array<i32>} : memref<3x8x128xf32, #tpu.memory_space<vmem>>, vector<1x8x128xf32>,
    %c1 = arith.constant 1 : index
    %c0_12 = arith.constant 0 : index
    %c0_13 = arith.constant 0 : index
    %25 = vector.load %arg3[%c1, %c0_12, %c0_13] : memref<3x8x128xf32, #tpu.memory_space<vmem>>, vector<1x8x128xf32>
    %26 = vector.shape_cast %25 : vector<1x8x128xf32> to vector<8x128xf32>
    %27 = arith.addf %26, %16 : vector<8x128xf32>
    %c1_14 = arith.constant 1 : index
    %c0_15 = arith.constant 0 : index
    %c0_16 = arith.constant 0 : index
    %28 = vector.load %arg3[%c1_14, %c0_15, %c0_16] : memref<3x8x128xf32, #tpu.memory_space<vmem>>, vector<1x8x128xf32>
    %29 = vector.shape_cast %28 : vector<1x8x128xf32> to vector<8x128xf32>
    %30 = vector.shape_cast %27 : vector<8x128xf32> to vector<1x8x128xf32>
    tpu.vector_store %arg3[%c1_14, %c0_15, %c0_16], %30 {strides = array<i32>} : memref<3x8x128xf32, #tpu.memory_space<vmem>>, vector<1x8x128xf32>,
    %c2 = arith.constant 2 : index
    %c0_17 = arith.constant 0 : index
    %c0_18 = arith.constant 0 : index
    %31 = vector.load %arg3[%c2, %c0_17, %c0_18] : memref<3x8x128xf32, #tpu.memory_space<vmem>>, vector<1x8x128xf32>
    %32 = vector.shape_cast %31 : vector<1x8x128xf32> to vector<8x128xf32>
    %33 = arith.addf %32, %18 : vector<8x128xf32>
    %c2_19 = arith.constant 2 : index
    %c0_20 = arith.constant 0 : index
    %c0_21 = arith.constant 0 : index
    %34 = vector.load %arg3[%c2_19, %c0_20, %c0_21] : memref<3x8x128xf32, #tpu.memory_space<vmem>>, vector<1x8x128xf32>
    %35 = vector.shape_cast %34 : vector<1x8x128xf32> to vector<8x128xf32>
    %36 = vector.shape_cast %33 : vector<8x128xf32> to vector<1x8x128xf32>
    tpu.vector_store %arg3[%c2_19, %c0_20, %c0_21], %36 {strides = array<i32>} : memref<3x8x128xf32, #tpu.memory_space<vmem>>, vector<1x8x128xf32>,
    return
  }
  func.func @transform_0(%arg0: i32) -> (i32, i32) {
    %c0_i32 = arith.constant 0 : i32
    %c0_i32_0 = arith.constant 0 : i32
    return %arg0, %c0_i32 : i32, i32
  }
  func.func @transform_1(%arg0: i32) -> (i32, i32) {
    %c0_i32 = arith.constant 0 : i32
    %c0_i32_0 = arith.constant 0 : i32
    return %arg0, %c0_i32 : i32, i32
  }
  func.func @transform_2(%arg0: i32) -> (i32, i32, i32) {
    %c0_i32 = arith.constant 0 : i32
    %c0_i32_0 = arith.constant 0 : i32
    %c0_i32_1 = arith.constant 0 : i32
    %c0_i32_2 = arith.constant 0 : i32
    return %c0_i32, %c0_i32_0, %c0_i32_1 : i32, i32, i32
  }
}

</mosaic_0001>

<bundles_post_ra>
// kernel: soft_dice_loss.1
= control target key start
LH: loop header
LB: loop body
LE: loop exit
PB: predicated region body
PF: predicated region fallthrough
CT: control target
= control target key end

     0   :  { %s86_s0 = inlined_call_operand.vmem [shape: f32[16,128], index: 0, kind: input, shape index: {}]   ;;  %s87_s1 = inlined_call_operand.vmem [shape: f32[16,128], index: 1, kind: input, shape index: {}]   ;;  %s88_s2 = inlined_call_operand.vmem [shape: f32[3,8,128], index: 2, kind: output, shape index: {}]  }
   0x1   :  { %v18_v0 = vld [vmem:[%s86_s0] sm:$0xff]  ;;  %v19_v1 = vld [vmem:[%s86_s0 + $0x8] sm:$0xff] }
   0x2   :  { %v20_v2 = vld [vmem:[%s87_s1] sm:$0xff]  ;;  %v21_v3 = vld [vmem:[%s87_s1 + $0x8] sm:$0xff]  ;;  %v26_v5 = vadd.f32 %v19_v1, %v18_v0 }
   0x3   :  { %v22_v4 = vmul.f32 %v20_v2, %v18_v0  ;;  %v23_v6 = vmul.f32 %v21_v3, %v19_v1  ;;  %v28_v7 = vadd.f32 %v21_v3, %v20_v2 }
   0x4   :  { %46 = vst [vmem:[%s88_s2 + $0x8] sm:$0xff] %v26_v5 }
   0x5   :  { %v24_v8 = vadd.f32 %v23_v6, %v22_v4  ;;  %48 = vst [vmem:[%s88_s2 + $0x10] sm:$0xff] %v28_v7 }
   0x7   :  { %32 = vst [vmem:[%s88_s2] sm:$0xff] %v24_v8 }

</bundles_post_ra>
